<compile_context>
chip_gen: v7x
topology: tpu7x:2x2x1
jax: 0.10.0
libtpu: 0.0.40
codegen_flags: <defaults>
</compile_context>

<pallas_src>
import numpy as np
import jax
import jax.numpy as jnp
from jax.experimental import pallas as pl
from jax.experimental.pallas import tpu as pltpu


_VMEM = pl.BlockSpec(memory_space=pltpu.MemorySpace.VMEM)

_LEAKY_SLOPE = 0.2
_BN_EPS = 1e-5
_LANE = 128


def _round_up(v, m):
    return -(-v // m) * m


# ------------------------------ Pallas kernel -------------------------------

def _make_fused_kernel(plan, *, slope=_LEAKY_SLOPE, eps=_BN_EPS):
    """Builds the fused forward kernel.

    `plan` is a STATIC list of per-conv-layer dicts:
        {"use_bn": bool, "spatial": Ho*Wo, "channels": Cout,
         "gb_offset": int (BN only), "g_offset": int (BN & spatial>1 only)}
    Kernel ref order:
        x_flat, conv_mat[0..L-1], gb_buf, g_buf, fc_w, out.
    """
    n_layers = len(plan)

    def kernel(*refs):
        x_ref = refs[0]
        m_refs = refs[1:1 + n_layers]
        gb_ref = refs[1 + n_layers]        # (2, gb_cols) f32: tiled [gamma; beta]
        g_ref = refs[2 + n_layers]         # (g_rows, g_cols) bf16: packed G mats
        fc_ref = refs[3 + n_layers]        # (F, 1) bf16
        out_ref = refs[4 + n_layers]       # (B, 1) f32

        a = x_ref[...]                                         # (B, F0) f32
        b = a.shape[0]
        for lyr, m_ref in zip(plan, m_refs):
            m = m_ref[...]                                     # (Fin, S*C) bf16
            # Conv as one MXU matmul: bf16 operands, f32 accumulation.
            y = jnp.dot(a.astype(m.dtype), m,
                        preferred_element_type=jnp.float32)    # (B, S*C) f32
            if lyr["use_bn"]:
                s, c = lyr["spatial"], lyr["channels"]
                w = s * c
                inv_n = 1.0 / float(b * s)                     # static
                off = lyr["gb_offset"]
                gb = gb_ref[0:2, off:off + w]                  # (2, S*C) f32
                # Merge first/second-moment sums into ONE dot: stack along the
                # batch axis (M: B -> 2B).  y*y is formed in f32, then the
                # operand is cast to bf16 for a single-pass MXU dot (f32 acc).
                y2 = jnp.concatenate([y, y * y], axis=0)       # (2B, S*C) f32
                if s > 1:
                    goff = lyr["g_offset"]
                    g = g_ref[0:w, goff:goff + w]              # (S*C, S*C) bf16
                    # Group all-reduce matmul: every output column j holds the
                    # sum over all spatial positions of channel (j % C), i.e.
                    # the per-channel sums already broadcast across spatial.
                    stats = jnp.dot(y2.astype(g.dtype), g,
                                    preferred_element_type=jnp.float32)
                else:
                    stats = y2                                 # columns == channels
                ysum = jnp.sum(stats[0:b], axis=0, keepdims=True)      # (1, S*C)
                ysq = jnp.sum(stats[b:2 * b], axis=0, keepdims=True)   # (1, S*C)
                # One-pass batch stats (train mode, biased variance), f32.
                mean = ysum * inv_n
                var = jnp.maximum(ysq * inv_n - mean * mean, 0.0)
                scale = gb[0:1] * jax.lax.rsqrt(var + eps)     # gamma_tiled * ...
                shift = gb[1:2] - mean * scale                 # beta_tiled - ...
                y = y * scale + shift
            a = jnp.maximum(y, slope * y)                      # LeakyReLU(0.2)

        fc = fc_ref[...]                                       # (F, 1) bf16
        z = jnp.dot(a.astype(fc.dtype), fc,
                    preferred_element_type=jnp.float32)        # (B, 1) f32
        # Numerically stable sigmoid; exact reciprocal (output is tiny and the
        # approx EUP reciprocal can round to exactly 1.0).
        e = jnp.exp(-jnp.abs(z))
        r = 1.0 / (1.0 + e)
        out_ref[...] = jnp.where(z >= 0.0, r, e * r)

    return kernel


# ------------------- Init-time lowering of the conv layers ------------------

def _conv_as_matrix(w_oihw, h_in, w_in, *, stride=2, pad=1, nchw_input):
    """Lower Conv2d(KHxKW, stride, pad, bias=False) to a dense matrix M so that
    y_flat = x_flat @ M, with
      x_flat index = ci*H*W + h*W + w      if nchw_input  (raw NCHW image)
                   = (h*W + w)*Cin + ci    otherwise      (internal layout)
      y_flat index = (ho*Wo + wo)*Cout + co               (channel-fastest)
    """
    w = np.asarray(w_oihw, dtype=np.float32)          # (Co, Ci, KH, KW)
    co_n, ci_n, kh_n, kw_n = w.shape
    h_out = (h_in + 2 * pad - kh_n) // stride + 1
    w_out = (w_in + 2 * pad - kw_n) // stride + 1
    mat = np.zeros((h_in * w_in * ci_n, h_out * w_out * co_n), np.float32)
    ci_idx = np.arange(ci_n)
    co_idx = np.arange(co_n)
    for ho in range(h_out):
        for wo in range(w_out):
            cols = (ho * w_out + wo) * co_n + co_idx
            for kh in range(kh_n):
                h = stride * ho - pad + kh
                if h < 0 or h >= h_in:
                    continue
                for kw in range(kw_n):
                    ww = stride * wo - pad + kw
                    if ww < 0 or ww >= w_in:
                        continue
                    if nchw_input:
                        rows = ci_idx * (h_in * w_in) + h * w_in + ww
                    else:
                        rows = (h * w_in + ww) * ci_n + ci_idx
                    mat[np.ix_(rows, cols)] = w[:, :, kh, kw].T   # (Ci, Co)
    return jnp.asarray(mat), h_out, w_out


def init_discriminator(key, img_size=16, img_channels=3,
                       generator_num_features=32, n_layers=4):
    """Mirrors the PyTorch module's parameter shapes/init, then pre-lowers
    every conv to dense-matrix form and packs the BN params.  Returns
    (plan, kernel_inputs)."""
    assert img_size % (2 ** n_layers) == 0
    out_channels = [int(generator_num_features / 2 ** i)
                    for i in range(n_layers)][::-1]
    in_channels = [img_channels] + out_channels[:-1]

    plan, conv_mats = [], []
    gb_segs, g_segs = [], []
    gb_off = g_off = 0
    g_rows = 0
    h = w = img_size
    for i, (ci, co) in enumerate(zip(in_channels, out_channels)):
        key, sub = jax.random.split(key)
        bound = 1.0 / (ci * 4 * 4) ** 0.5             # Conv2d uniform init, no bias
        w_conv = jax.random.uniform(sub, (co, ci, 4, 4), jnp.float32, -bound, bound)
        mat, h, w = _conv_as_matrix(w_conv, h, w, nchw_input=(i == 0))
        conv_mats.append(mat.astype(jnp.bfloat16))    # bf16 MXU operand
        spatial = h * w
        entry = {"use_bn": i > 0, "spatial": spatial, "channels": co}
        if entry["use_bn"]:                           # BatchNorm2d default init
            width = spatial * co
            gamma = np.ones(co, np.float32)
            beta = np.zeros(co, np.float32)
            # Pre-tile to the channel-fastest activation layout (broadcast done
            # at init, not in the kernel).
            gb_segs.append((gb_off, np.stack([np.tile(gamma, spatial),
                                              np.tile(beta, spatial)])))
            entry["gb_offset"] = gb_off
            gb_off += _round_up(width, _LANE)
            if spatial > 1:
                idx = np.arange(width)
                gmat = (idx[:, None] % co == idx[None, :] % co).astype(np.float32)
                g_segs.append((g_off, gmat))          # group all-reduce matrix
                entry["g_offset"] = g_off
                g_off += _round_up(width, _LANE)
                g_rows = max(g_rows, width)
        plan.append(entry)

    # Pack every small BN parameter into TWO operands (fewer tiny DMAs); all
    # in-kernel slice offsets are static and 128-lane aligned.
    gb_buf = np.zeros((2, max(gb_off, _LANE)), np.float32)
    for off, seg in gb_segs:
        gb_buf[:, off:off + seg.shape[1]] = seg
    g_buf = np.zeros((max(g_rows, 8), max(g_off, _LANE)), np.float32)
    for off, seg in g_segs:
        g_buf[:seg.shape[0], off:off + seg.shape[1]] = seg

    first_height = img_size // 2 ** n_layers
    final_size = generator_num_features * first_height * first_height
    key, sub = jax.random.split(key)
    bound = 1.0 / final_size ** 0.5                   # Linear init, no bias
    fc = jax.random.uniform(sub, (final_size, 1), jnp.float32, -bound, bound)
    # Reorder fc rows from PyTorch's 'b c h w -> b (c h w)' flatten order to the
    # kernel's channel-fastest layout (identity when first_height == 1).
    s_last, c_last = first_height * first_height, generator_num_features
    j = np.arange(final_size)
    fc = fc[jnp.asarray((j % c_last) * s_last + j // c_last)]

    # Guard the memory-quadratic dense-conv lowering (v7x: 64 MiB physical VMEM,
    # 32 MiB default scoped limit on v6e/v7x, 16 MiB on v5e).
    total_bytes = (sum(int(m.size) * 2 for m in conv_mats)
                   + gb_buf.nbytes + int(g_buf.size) * 2 + int(fc.size) * 2)
    assert total_bytes < 24 * 1024 * 1024, (
        "dense conv-as-matrix lowering too large for VMEM at this img_size; "
        "switch layer 0 to an im2col GEMM with a K-tiled BlockSpec grid")

    inputs = tuple(conv_mats) + (jnp.asarray(gb_buf),
                                 jnp.asarray(g_buf, dtype=jnp.bfloat16),
                                 fc.astype(jnp.bfloat16))
    return plan, inputs


# --------------------------------- Forward ----------------------------------

def make_discriminator_forward(plan):
    kernel = _make_fused_kernel(plan)

    @jax.jit
    def forward(x_nchw, kernel_inputs):
        b = x_nchw.shape[0]
        # The only out-of-kernel glue: flatten the NCHW input (metadata reshape).
        x_flat = x_nchw.reshape(b, -1).astype(jnp.float32)
        return pl.pallas_call(
            kernel,
            out_shape=jax.ShapeDtypeStruct((b, 1), jnp.float32),
            in_specs=[_VMEM] * (1 + len(kernel_inputs)),
            out_specs=_VMEM,
            # Single-tile kernel, no grid: all operands (< ~1 MiB total at this
            # size) sit in VMEM on v5e / v6e / v7x.
        )(x_flat, *kernel_inputs)

    return forward


if __name__ == "__main__":
    # Small configuration consistent with the module:
    # img_size=16, img_channels=3, generator_num_features=32, n_layers=4
    # -> conv channels 3 -> 4 -> 8 -> 16 -> 32, spatial 16 -> 8 -> 4 -> 2 -> 1.
    batch, img_size, img_channels = 2, 16, 3
    generator_num_features, n_layers = 32, 4

    key = jax.random.PRNGKey(0)
    key, xk = jax.random.split(key)
    x = jax.random.normal(xk, (batch, img_channels, img_size, img_size),
                          dtype=jnp.float32)

    plan, kernel_inputs = init_discriminator(
        key, img_size, img_channels, generator_num_features, n_layers)
    forward = make_discriminator_forward(plan)

    out = jax.block_until_ready(forward(x, kernel_inputs))
    assert out.shape == (batch, 1)
    assert bool(jnp.all(jnp.isfinite(out)))
    assert bool(jnp.all((out > 0.0) & (out < 1.0)))   # sigmoid range
    print("KERNEL_OK")
</pallas_src>

<mosaic_0001>
module attributes {stable_mosaic.version = 11 : i64} {
  func.func @kernel(%arg0: memref<2x768xf32, #tpu.memory_space<vmem>>, %arg1: memref<768x256xbf16, #tpu.memory_space<vmem>>, %arg2: memref<256x128xbf16, #tpu.memory_space<vmem>>, %arg3: memref<128x64xbf16, #tpu.memory_space<vmem>>, %arg4: memref<64x32xbf16, #tpu.memory_space<vmem>>, %arg5: memref<2x384xf32, #tpu.memory_space<vmem>>, %arg6: memref<128x256xbf16, #tpu.memory_space<vmem>>, %arg7: memref<32x1xbf16, #tpu.memory_space<vmem>>, %arg8: memref<2x1xf32, #tpu.memory_space<vmem>>) attributes {dimension_semantics = [], scalar_prefetch = 0 : i64, scratch_operands = 0 : i64, tpu.core_type = #tpu.core_type<tc>} {
    %c0 = arith.constant 0 : index
    %c0_0 = arith.constant 0 : index
    %0 = vector.load %arg0[%c0, %c0_0] : memref<2x768xf32, #tpu.memory_space<vmem>>, vector<2x768xf32>
    %c0_1 = arith.constant 0 : index
    %c0_2 = arith.constant 0 : index
    %1 = vector.load %arg1[%c0_1, %c0_2] : memref<768x256xbf16, #tpu.memory_space<vmem>>, vector<768x256xbf16>
    %2 = arith.truncf %0 : vector<2x768xf32> to vector<2x768xbf16>
    %cst = arith.constant dense<0.000000e+00> : vector<2x256xf32>
    %3 = tpu.matmul %2, %1, %cst {dimension_numbers = #tpu.dot_dimension_numbers<[1], [0], [0], [1], [0, 0, 1, 1], [], []>} : vector<2x768xbf16>, vector<768x256xbf16>, vector<2x256xf32> -> vector<2x256xf32>
    %cst_3 = arith.constant 2.000000e-01 : f32
    %4 = vector.broadcast %cst_3 : f32 to vector<2x256xf32>
    %5 = arith.mulf %4, %3 : vector<2x256xf32>
    %6 = arith.maximumf %3, %5 : vector<2x256xf32>
    %c0_4 = arith.constant 0 : index
    %c0_5 = arith.constant 0 : index
    %7 = vector.load %arg2[%c0_4, %c0_5] : memref<256x128xbf16, #tpu.memory_space<vmem>>, vector<256x128xbf16>
    %8 = arith.truncf %6 : vector<2x256xf32> to vector<2x256xbf16>
    %cst_6 = arith.constant dense<0.000000e+00> : vector<2x128xf32>
    %9 = tpu.matmul %8, %7, %cst_6 {dimension_numbers = #tpu.dot_dimension_numbers<[1], [0], [0], [1], [0, 0, 1, 1], [], []>} : vector<2x256xbf16>, vector<256x128xbf16>, vector<2x128xf32> -> vector<2x128xf32>
    %c0_7 = arith.constant 0 : index
    %c0_8 = arith.constant 0 : index
    %10 = vector.load %arg5[%c0_7, %c0_8] : memref<2x384xf32, #tpu.memory_space<vmem>>, vector<2x128xf32>
    %11 = arith.mulf %9, %9 : vector<2x128xf32>
    %12 = tpu.concatenate %9, %11 in 0 : vector<2x128xf32>, vector<2x128xf32> -> vector<4x128xf32>
    %c0_9 = arith.constant 0 : index
    %c0_10 = arith.constant 0 : index
    %13 = vector.load %arg6[%c0_9, %c0_10] : memref<128x256xbf16, #tpu.memory_space<vmem>>, vector<128x128xbf16>
    %14 = arith.truncf %12 : vector<4x128xf32> to vector<4x128xbf16>
    %cst_11 = arith.constant dense<0.000000e+00> : vector<4x128xf32>
    %15 = tpu.matmul %14, %13, %cst_11 {dimension_numbers = #tpu.dot_dimension_numbers<[1], [0], [0], [1], [0, 0, 1, 1], [], []>} : vector<4x128xbf16>, vector<128x128xbf16>, vector<4x128xf32> -> vector<4x128xf32>
    %16 = vector.extract_strided_slice %15 {offsets = [0, 0], sizes = [2, 128], strides = [1, 1]} : vector<4x128xf32> to vector<2x128xf32>
    %cst_12 = arith.constant dense<0.000000e+00> : vector<128xf32>
    %17 = vector.multi_reduction <add>, %16, %cst_12 [0] : vector<2x128xf32> to vector<128xf32>
    %18 = vector.shape_cast %17 : vector<128xf32> to vector<1x128xf32>
    %19 = vector.extract_strided_slice %15 {offsets = [2, 0], sizes = [2, 128], strides = [1, 1]} : vector<4x128xf32> to vector<2x128xf32>
    %cst_13 = arith.constant dense<0.000000e+00> : vector<128xf32>
    %20 = vector.multi_reduction <add>, %19, %cst_13 [0] : vector<2x128xf32> to vector<128xf32>
    %21 = vector.shape_cast %20 : vector<128xf32> to vector<1x128xf32>
    %cst_14 = arith.constant 3.125000e-02 : f32
    %22 = vector.broadcast %cst_14 : f32 to vector<1x128xf32>
    %23 = arith.mulf %18, %22 : vector<1x128xf32>
    %cst_15 = arith.constant 3.125000e-02 : f32
    %24 = vector.broadcast %cst_15 : f32 to vector<1x128xf32>
    %25 = arith.mulf %21, %24 : vector<1x128xf32>
    %26 = arith.mulf %23, %23 : vector<1x128xf32>
    %27 = arith.subf %25, %26 : vector<1x128xf32>
    %cst_16 = arith.constant 0.000000e+00 : f32
    %28 = vector.broadcast %cst_16 : f32 to vector<1x128xf32>
    %29 = arith.maximumf %27, %28 : vector<1x128xf32>
    %30 = vector.extract_strided_slice %10 {offsets = [0, 0], sizes = [1, 128], strides = [1, 1]} : vector<2x128xf32> to vector<1x128xf32>
    %cst_17 = arith.constant 9.99999974E-6 : f32
    %31 = vector.broadcast %cst_17 : f32 to vector<1x128xf32>
    %32 = arith.addf %29, %31 : vector<1x128xf32>
    %33 = math.rsqrt %32 : vector<1x128xf32>
    %34 = arith.mulf %30, %33 : vector<1x128xf32>
    %35 = vector.extract_strided_slice %10 {offsets = [1, 0], sizes = [1, 128], strides = [1, 1]} : vector<2x128xf32> to vector<1x128xf32>
    %36 = arith.mulf %23, %34 : vector<1x128xf32>
    %37 = arith.subf %35, %36 : vector<1x128xf32>
    %38 = vector.broadcast %34 : vector<1x128xf32> to vector<2x128xf32>
    %39 = arith.mulf %9, %38 : vector<2x128xf32>
    %40 = vector.broadcast %37 : vector<1x128xf32> to vector<2x128xf32>
    %41 = arith.addf %39, %40 : vector<2x128xf32>
    %cst_18 = arith.constant 2.000000e-01 : f32
    %42 = vector.broadcast %cst_18 : f32 to vector<2x128xf32>
    %43 = arith.mulf %42, %41 : vector<2x128xf32>
    %44 = arith.maximumf %41, %43 : vector<2x128xf32>
    %c0_19 = arith.constant 0 : index
    %c0_20 = arith.constant 0 : index
    %45 = vector.load %arg3[%c0_19, %c0_20] : memref<128x64xbf16, #tpu.memory_space<vmem>>, vector<128x64xbf16>
    %46 = arith.truncf %44 : vector<2x128xf32> to vector<2x128xbf16>
    %cst_21 = arith.constant dense<0.000000e+00> : vector<2x64xf32>
    %47 = tpu.matmul %46, %45, %cst_21 {dimension_numbers = #tpu.dot_dimension_numbers<[1], [0], [0], [1], [0, 0, 1, 1], [], []>} : vector<2x128xbf16>, vector<128x64xbf16>, vector<2x64xf32> -> vector<2x64xf32>
    %c0_22 = arith.constant 0 : index
    %c128 = arith.constant 128 : index
    %48 = vector.load %arg5[%c0_22, %c128] : memref<2x384xf32, #tpu.memory_space<vmem>>, vector<2x64xf32>
    %49 = arith.mulf %47, %47 : vector<2x64xf32>
    %50 = tpu.concatenate %47, %49 in 0 : vector<2x64xf32>, vector<2x64xf32> -> vector<4x64xf32>
    %c0_23 = arith.constant 0 : index
    %c128_24 = arith.constant 128 : index
    %51 = vector.load %arg6[%c0_23, %c128_24] : memref<128x256xbf16, #tpu.memory_space<vmem>>, vector<64x64xbf16>
    %52 = arith.truncf %50 : vector<4x64xf32> to vector<4x64xbf16>
    %cst_25 = arith.constant dense<0.000000e+00> : vector<4x64xf32>
    %53 = tpu.matmul %52, %51, %cst_25 {dimension_numbers = #tpu.dot_dimension_numbers<[1], [0], [0], [1], [0, 0, 1, 1], [], []>} : vector<4x64xbf16>, vector<64x64xbf16>, vector<4x64xf32> -> vector<4x64xf32>
    %54 = vector.extract_strided_slice %53 {offsets = [0, 0], sizes = [2, 64], strides = [1, 1]} : vector<4x64xf32> to vector<2x64xf32>
    %cst_26 = arith.constant dense<0.000000e+00> : vector<64xf32>
    %55 = vector.multi_reduction <add>, %54, %cst_26 [0] : vector<2x64xf32> to vector<64xf32>
    %56 = vector.shape_cast %55 : vector<64xf32> to vector<1x64xf32>
    %57 = vector.extract_strided_slice %53 {offsets = [2, 0], sizes = [2, 64], strides = [1, 1]} : vector<4x64xf32> to vector<2x64xf32>
    %cst_27 = arith.constant dense<0.000000e+00> : vector<64xf32>
    %58 = vector.multi_reduction <add>, %57, %cst_27 [0] : vector<2x64xf32> to vector<64xf32>
    %59 = vector.shape_cast %58 : vector<64xf32> to vector<1x64xf32>
    %cst_28 = arith.constant 1.250000e-01 : f32
    %60 = vector.broadcast %cst_28 : f32 to vector<1x64xf32>
    %61 = arith.mulf %56, %60 : vector<1x64xf32>
    %cst_29 = arith.constant 1.250000e-01 : f32
    %62 = vector.broadcast %cst_29 : f32 to vector<1x64xf32>
    %63 = arith.mulf %59, %62 : vector<1x64xf32>
    %64 = arith.mulf %61, %61 : vector<1x64xf32>
    %65 = arith.subf %63, %64 : vector<1x64xf32>
    %cst_30 = arith.constant 0.000000e+00 : f32
    %66 = vector.broadcast %cst_30 : f32 to vector<1x64xf32>
    %67 = arith.maximumf %65, %66 : vector<1x64xf32>
    %68 = vector.extract_strided_slice %48 {offsets = [0, 0], sizes = [1, 64], strides = [1, 1]} : vector<2x64xf32> to vector<1x64xf32>
    %cst_31 = arith.constant 9.99999974E-6 : f32
    %69 = vector.broadcast %cst_31 : f32 to vector<1x64xf32>
    %70 = arith.addf %67, %69 : vector<1x64xf32>
    %71 = math.rsqrt %70 : vector<1x64xf32>
    %72 = arith.mulf %68, %71 : vector<1x64xf32>
    %73 = vector.extract_strided_slice %48 {offsets = [1, 0], sizes = [1, 64], strides = [1, 1]} : vector<2x64xf32> to vector<1x64xf32>
    %74 = arith.mulf %61, %72 : vector<1x64xf32>
    %75 = arith.subf %73, %74 : vector<1x64xf32>
    %76 = vector.broadcast %72 : vector<1x64xf32> to vector<2x64xf32>
    %77 = arith.mulf %47, %76 : vector<2x64xf32>
    %78 = vector.broadcast %75 : vector<1x64xf32> to vector<2x64xf32>
    %79 = arith.addf %77, %78 : vector<2x64xf32>
    %cst_32 = arith.constant 2.000000e-01 : f32
    %80 = vector.broadcast %cst_32 : f32 to vector<2x64xf32>
    %81 = arith.mulf %80, %79 : vector<2x64xf32>
    %82 = arith.maximumf %79, %81 : vector<2x64xf32>
    %c0_33 = arith.constant 0 : index
    %c0_34 = arith.constant 0 : index
    %83 = vector.load %arg4[%c0_33, %c0_34] : memref<64x32xbf16, #tpu.memory_space<vmem>>, vector<64x32xbf16>
    %84 = arith.truncf %82 : vector<2x64xf32> to vector<2x64xbf16>
    %cst_35 = arith.constant dense<0.000000e+00> : vector<2x32xf32>
    %85 = tpu.matmul %84, %83, %cst_35 {dimension_numbers = #tpu.dot_dimension_numbers<[1], [0], [0], [1], [0, 0, 1, 1], [], []>} : vector<2x64xbf16>, vector<64x32xbf16>, vector<2x32xf32> -> vector<2x32xf32>
    %c0_36 = arith.constant 0 : index
    %c256 = arith.constant 256 : index
    %86 = vector.load %arg5[%c0_36, %c256] : memref<2x384xf32, #tpu.memory_space<vmem>>, vector<2x32xf32>
    %87 = arith.mulf %85, %85 : vector<2x32xf32>
    %88 = tpu.concatenate %85, %87 in 0 : vector<2x32xf32>, vector<2x32xf32> -> vector<4x32xf32>
    %89 = vector.extract_strided_slice %88 {offsets = [0, 0], sizes = [2, 32], strides = [1, 1]} : vector<4x32xf32> to vector<2x32xf32>
    %cst_37 = arith.constant dense<0.000000e+00> : vector<32xf32>
    %90 = vector.multi_reduction <add>, %89, %cst_37 [0] : vector<2x32xf32> to vector<32xf32>
    %91 = vector.shape_cast %90 : vector<32xf32> to vector<1x32xf32>
    %92 = vector.extract_strided_slice %88 {offsets = [2, 0], sizes = [2, 32], strides = [1, 1]} : vector<4x32xf32> to vector<2x32xf32>
    %cst_38 = arith.constant dense<0.000000e+00> : vector<32xf32>
    %93 = vector.multi_reduction <add>, %92, %cst_38 [0] : vector<2x32xf32> to vector<32xf32>
    %94 = vector.shape_cast %93 : vector<32xf32> to vector<1x32xf32>
    %cst_39 = arith.constant 5.000000e-01 : f32
    %95 = vector.broadcast %cst_39 : f32 to vector<1x32xf32>
    %96 = arith.mulf %91, %95 : vector<1x32xf32>
    %cst_40 = arith.constant 5.000000e-01 : f32
    %97 = vector.broadcast %cst_40 : f32 to vector<1x32xf32>
    %98 = arith.mulf %94, %97 : vector<1x32xf32>
    %99 = arith.mulf %96, %96 : vector<1x32xf32>
    %100 = arith.subf %98, %99 : vector<1x32xf32>
    %cst_41 = arith.constant 0.000000e+00 : f32
    %101 = vector.broadcast %cst_41 : f32 to vector<1x32xf32>
    %102 = arith.maximumf %100, %101 : vector<1x32xf32>
    %103 = vector.extract_strided_slice %86 {offsets = [0, 0], sizes = [1, 32], strides = [1, 1]} : vector<2x32xf32> to vector<1x32xf32>
    %cst_42 = arith.constant 9.99999974E-6 : f32
    %104 = vector.broadcast %cst_42 : f32 to vector<1x32xf32>
    %105 = arith.addf %102, %104 : vector<1x32xf32>
    %106 = math.rsqrt %105 : vector<1x32xf32>
    %107 = arith.mulf %103, %106 : vector<1x32xf32>
    %108 = vector.extract_strided_slice %86 {offsets = [1, 0], sizes = [1, 32], strides = [1, 1]} : vector<2x32xf32> to vector<1x32xf32>
    %109 = arith.mulf %96, %107 : vector<1x32xf32>
    %110 = arith.subf %108, %109 : vector<1x32xf32>
    %111 = vector.broadcast %107 : vector<1x32xf32> to vector<2x32xf32>
    %112 = arith.mulf %85, %111 : vector<2x32xf32>
    %113 = vector.broadcast %110 : vector<1x32xf32> to vector<2x32xf32>
    %114 = arith.addf %112, %113 : vector<2x32xf32>
    %cst_43 = arith.constant 2.000000e-01 : f32
    %115 = vector.broadcast %cst_43 : f32 to vector<2x32xf32>
    %116 = arith.mulf %115, %114 : vector<2x32xf32>
    %117 = arith.maximumf %114, %116 : vector<2x32xf32>
    %c0_44 = arith.constant 0 : index
    %c0_45 = arith.constant 0 : index
    %118 = vector.load %arg7[%c0_44, %c0_45] : memref<32x1xbf16, #tpu.memory_space<vmem>>, vector<32x1xbf16>
    %119 = arith.truncf %117 : vector<2x32xf32> to vector<2x32xbf16>
    %cst_46 = arith.constant dense<0.000000e+00> : vector<2x1xf32>
    %120 = tpu.matmul %119, %118, %cst_46 {dimension_numbers = #tpu.dot_dimension_numbers<[1], [0], [0], [1], [0, 0, 1, 1], [], []>} : vector<2x32xbf16>, vector<32x1xbf16>, vector<2x1xf32> -> vector<2x1xf32>
    %121 = math.absf %120 : vector<2x1xf32>
    %cst_47 = arith.constant 0.000000e+00 : f32
    %122 = vector.broadcast %cst_47 : f32 to vector<2x1xf32>
    %123 = arith.subf %122, %121 : vector<2x1xf32>
    %124 = math.exp %123 : vector<2x1xf32>
    %cst_48 = arith.constant 1.000000e+00 : f32
    %125 = vector.broadcast %cst_48 : f32 to vector<2x1xf32>
    %126 = arith.addf %125, %124 : vector<2x1xf32>
    %cst_49 = arith.constant 1.000000e+00 : f32
    %127 = vector.broadcast %cst_49 : f32 to vector<2x1xf32>
    %128 = arith.divf %127, %126 : vector<2x1xf32>
    %cst_50 = arith.constant 0.000000e+00 : f32
    %129 = vector.broadcast %cst_50 : f32 to vector<2x1xf32>
    %130 = arith.cmpf oge, %120, %129 : vector<2x1xf32>
    %131 = arith.mulf %124, %128 : vector<2x1xf32>
    %132 = arith.select %130, %128, %131 : vector<2x1xi1>, vector<2x1xf32>
    %c0_51 = arith.constant 0 : index
    %c0_52 = arith.constant 0 : index
    %133 = vector.load %arg8[%c0_51, %c0_52] : memref<2x1xf32, #tpu.memory_space<vmem>>, vector<2x1xf32>
    tpu.vector_store %arg8[%c0_51, %c0_52], %132 {strides = array<i32>} : memref<2x1xf32, #tpu.memory_space<vmem>>, vector<2x1xf32>,
    return
  }
}

</mosaic_0001>

<bundles_post_ra>
// kernel: forward.1
= control target key start
LH: loop header
LB: loop body
LE: loop exit
PB: predicated region body
PF: predicated region fallthrough
CT: control target
= control target key end

     0   :  { %13 = vsyncpa [#allocation3], 0  ;;  %s2069_s27 = smov [#allocation2]   ;;  %s2359_s0 = inlined_call_operand.vmem [shape: f32[2,768], index: 0, kind: input, shape index: {}]   ;;  %s2360_s1 = inlined_call_operand.hbm [shape: bf16[768,256], index: 1, kind: input, shape index: {}]   ;;  %s2361_s2 = inlined_call_operand.vmem [shape: bf16[256,128], index: 2, kind: input, shape index: {}]   ;;  %s2362_s3 = inlined_call_operand.vmem [shape: bf16[128,64], index: 3, kind: input, shape index: {}]   ;;  %s2363_s4 = inlined_call_operand.vmem [shape: bf16[64,32], index: 4, kind: input, shape index: {}]   ;;  %s2364_s5 = inlined_call_operand.vmem [shape: f32[2,384], index: 5, kind: input, shape index: {}]   ;;  %s2365_s6 = inlined_call_operand.vmem [shape: bf16[128,256], index: 6, kind: input, shape index: {}]   ;;  %s2366_s7 = inlined_call_operand.vmem [shape: bf16[32,1], index: 7, kind: input, shape index: {}]   ;;  %s2367_s8 = inlined_call_operand.vmem [shape: f32[2,1], index: 8, kind: output, shape index: {}]  }
   0x1   :  { %s21_s28 = sshll.u32 %s2069_s27, 4  ;;  %s2045_s9 = scalar_lea.hbm %s2360_s1, 12288  ;;  %s22_s28 = int_to_ptr.vmem [resolvable:$true] %s21_s28 }
   0x2   :  { %p2046_p0 = scmp.ne.s32.totalorder %s2360_s1, %s2045_s9  ;;  %p2049_p1 = scmp.lt.u32.totalorder %s2045_s9, %s2360_s1 }
   0x4   :  { %p2051_p2 = pnand %p2049_p1, %p2046_p0 }
   0x6   :  { %2054 = shalt.err (!%p2051_p2)
}
   0x7   :  { %s2055_s14 = scalar_lea.vmem %s22_s28, 12288  ;;  %p2060_p4 = scmp.lt.s32.totalorder %s22_s28, %s22_s28 }
   0x8   :  { %p2056_p3 = scmp.ne.s32.totalorder %s22_s28, %s2055_s14  ;;  %p2061_p5 = scmp.lt.s32.totalorder %s2055_s14, %s2055_s14 }
   0xa   :  { %p2062_p6 = por %p2061_p5, %p2060_p4 }
   0xc   :  { %p2063_p7 = pnand %p2062_p6, %p2056_p3 }
   0xe   :  { %2066 = shalt.err (!%p2063_p7)
}
   0xf   :  { %s2070_s15 = smov 128   ;;  %s2071_s16 = smov 8  }
  0x10   :  { %27 = dma.hbm_to_vmem [thread:$0]  %s2360_s1, 12288, %s22_s28, [#allocation3], %s2070_s15, %s2070_s15, %s2071_s16  }
  0x11   :  { %2067 = dma.done.wait [#allocation3], 12288  }
  0x12   :  { %2068 = vsyncadd [#allocation3], 4294955008  ;;  %v1848_v0 = vld [vmem:[#allocation2 + $0x4] ss:$8 sps:$4 sm:$0xff]   ;;  %v1850_v1 = vld [vmem:[#allocation2] ss:$8 sps:$4 sm:$0xff]   ;;  %v148_v9 = vlaneseq }
  0x13   :  { %661 = vmatprep.subr.bf16.mxu0 %v1848_v0  ;;  %v1851_v2 = vld [vmem:[#allocation2 + $0x14] ss:$8 sps:$4 sm:$0xff]   ;;  %v1853_v3 = vld [vmem:[#allocation2 + $0x10] ss:$8 sps:$4 sm:$0xff]   ;;  %v1854_v4 = vld [vmem:[#allocation2 + $0x24] ss:$8 sps:$4 sm:$0xff]  }
  0x14   :  { %662 = vmatpush1.bf16.msra.mxu0 %v1850_v1  ;;  %v1856_v5 = vld [vmem:[#allocation2 + $0x20] ss:$8 sps:$4 sm:$0xff]   ;;  %v1857_v6 = vld [vmem:[#allocation2 + $0x34] ss:$8 sps:$4 sm:$0xff]   ;;  %v2072_v7 = vmov 1983009808  }
  0x15   :  { %663 = vmatprep.subr.bf16.mxu0 %v1851_v2  ;;  %v146_v8 = vunpack.c.l.s4 %v2072_v7  ;;  %v1859_v10 = vld [vmem:[#allocation2 + $0x30] ss:$8 sps:$4 sm:$0xff]   ;;  %v1860_v11 = vld [vmem:[#allocation2 + $0x44] ss:$8 sps:$4 sm:$0xff]   ;;  %v2132_v13 = vshrl.u32 %v148_v9, 7  ;;  %vm2074_vm0 = vmmov 0  }
  0x16   :  { %v1862_v14 = vld [vmem:[#allocation2 + $0x40] ss:$8 sps:$4 sm:$0xff]   ;;  %v1863_v15 = vld [vmem:[#allocation2 + $0x54] ss:$8 sps:$4 sm:$0xff]   ;;  %v1865_v17 = vld [vmem:[#allocation2 + $0x50] ss:$8 sps:$4 sm:$0xff]  }
  0x17   :  { %v147_v12 = vunpack.c.0.s8 %v146_v8  ;;  %v1866_v18 = vld [vmem:[#allocation2 + $0x64] ss:$8 sps:$4 sm:$0xff]   ;;  %v1868_v21 = vld [vmem:[#allocation2 + $0x60] ss:$8 sps:$4 sm:$0xff]   ;;  %v1869_v22 = vld [vmem:[#allocation2 + $0x74] ss:$8 sps:$4 sm:$0xff]  }
  0x18   :  { %664 = vmatpush1.bf16.msra.mxu0 %v1853_v3  ;;  %v44_v19 = vld [vmem:[%s2359_s0] sm:$0xff]  ;;  %v1871_v25 = vld [vmem:[#allocation2 + $0x70] ss:$8 sps:$4 sm:$0xff]   ;;  %v1875_v28 = vld [vmem:[#allocation2 + $0x94] ss:$8 sps:$4 sm:$0xff]   ;;  %vm963_vm1 = vcmask 1041408  }
  0x19   :  { %665 = vmatprep.subr.bf16.mxu0 %v1854_v4  ;;  %v2135_v16 = vsub.s32 %v147_v12, %v2132_v13  ;;  %v1872_v26 = vld [vmem:[#allocation2 + $0x84] ss:$8 sps:$4 sm:$0xff]   ;;  %v1874_v27 = vld [vmem:[#allocation2 + $0x80] ss:$8 sps:$4 sm:$0xff]   ;;  %v1877_v29 = vld [vmem:[#allocation2 + $0x90] ss:$8 sps:$4 sm:$0xff]   ;;  %v144_v38 = vcombine.high %v44_v19, %v44_v19 }
  0x1a   :  { %v1878_v30 = vld [vmem:[#allocation2 + $0xa4] ss:$8 sps:$4 sm:$0xff]   ;;  %v1880_v31 = vld [vmem:[#allocation2 + $0xa0] ss:$8 sps:$4 sm:$0xff]   ;;  %v1881_v32 = vld [vmem:[#allocation2 + $0xb4] ss:$8 sps:$4 sm:$0xff]  }
  0x1b   :  { %v151_v20 = vrot.slane %v44_v19, %v2135_v16  ;;  %v1883_v33 = vld [vmem:[#allocation2 + $0xb0] ss:$8 sps:$4 sm:$0xff]   ;;  %v1884_v34 = vld [vmem:[#allocation2 + $0xc4] ss:$8 sps:$4 sm:$0xff]   ;;  %v1886_v35 = vld [vmem:[#allocation2 + $0xc0] ss:$8 sps:$4 sm:$0xff]   ;;  %v2142_v41 = vrot.slane %v144_v38, %v2135_v16 }
  0x1c   :  { %666 = vmatpush1.bf16.msra.mxu0 %v1856_v5  ;;  %v1887_v36 = vld [vmem:[#allocation2 + $0xd4] ss:$8 sps:$4 sm:$0xff]   ;;  %v1889_v37 = vld [vmem:[#allocation2 + $0xd0] ss:$8 sps:$4 sm:$0xff]   ;;  %v1890_v39 = vld [vmem:[#allocation2 + $0xe4] ss:$8 sps:$4 sm:$0xff]  }
  0x1d   :  { %667 = vmatprep.subr.bf16.mxu0 %v1857_v6  ;;  %v159_v23 = vcombine.high %v151_v20, %v151_v20  ;;  %v1892_v40 = vld [vmem:[#allocation2 + $0xe0] ss:$8 sps:$4 sm:$0xff]   ;;  %v1893_v42 = vld [vmem:[#allocation2 + $0xf4] ss:$8 sps:$4 sm:$0xff]   ;;  %v1895_v43 = vld [vmem:[#allocation2 + $0xf0] ss:$8 sps:$4 sm:$0xff]   ;;  %v160_v44 = vcombine.high %v2142_v41, %v2142_v41  ;;  %v175_v46 = vpack.c.bf16 %v151_v20, %v151_v20 }
  0x1e   :  { %v1899_v45 = vld [vmem:[#allocation2 + $0x104] ss:$8 sps:$4 sm:$0xff]   ;;  %v1897_v47 = vld [vmem:[#allocation2 + $0x100] ss:$8 sps:$4 sm:$0xff]   ;;  %v1902_v49 = vld [vmem:[#allocation2 + $0x114] ss:$8 sps:$4 sm:$0xff]  }
  0x1f   :  { %v176_v24 = vpack.c.bf16 %v159_v23, %v159_v23  ;;  %v178_v48 = vpack.c.bf16 %v160_v44, %v160_v44  ;;  %v1900_v50 = vld [vmem:[#allocation2 + $0x110] ss:$8 sps:$4 sm:$0xff]   ;;  %v1993_v51 = vld [vmem:[%s2361_s2 + $0x40] sm:$0xff]   ;;  %v1995_v53 = vld [vmem:[%s2361_s2 + $0x48] sm:$0xff]   ;;  %vm1263_vm2 = vcmask 523264   ;;  %vm1307_vm3 = vcmask 517120  }
  0x20   :  { %668 = vmatpush1.bf16.msra.mxu0 %v1859_v10  ;;  %v1994_v52 = vld [vmem:[%s2361_s2] sm:$0xff]   ;;  %1709 = vmatprep.subr.bf16.mxu1 %v1993_v51  ;;  %v1996_v55 = vld [vmem:[%s2361_s2 + $0x8] sm:$0xff]   ;;  %v1997_v56 = vld [vmem:[%s2361_s2 + $0x50] sm:$0xff]   ;;  %vm1439_vm4 = vcmask 254976   ;;  %vm1506_vm5 = vcmask 261120   ;;  %vm1560_vm6 = vcmask 1024  }
  0x21   :  { %669 = vmatprep.subr.bf16.mxu0 %v1860_v11  ;;  %693 = vmatprep.mubr.bf16.mxu0 %v176_v24  ;;  %v1905_v54 = vld [vmem:[#allocation2 + $0x124] ss:$8 sps:$4 sm:$0xff]   ;;  %v1903_v57 = vld [vmem:[#allocation2 + $0x120] ss:$8 sps:$4 sm:$0xff]   ;;  %v1908_v58 = vld [vmem:[#allocation2 + $0x134] ss:$8 sps:$4 sm:$0xff]  }
  0x22   :  { %1710 = vmatpush3.bf16.msra.mxu1 %v1994_v52  ;;  %v1906_v59 = vld [vmem:[#allocation2 + $0x130] ss:$8 sps:$4 sm:$0xff]   ;;  %v1911_v61 = vld [vmem:[#allocation2 + $0x144] ss:$8 sps:$4 sm:$0xff]   ;;  %v1909_v1 = vld [vmem:[#allocation2 + $0x140] ss:$8 sps:$4 sm:$0xff]  }
  0x23   :  { %1711 = vmatprep.subr.bf16.mxu1 %v1995_v53  ;;  %v1998_v60 = vld [vmem:[%s2361_s2 + $0x10] sm:$0xff]   ;;  %v1999_v62 = vld [vmem:[%s2361_s2 + $0x58] sm:$0xff]   ;;  %v2001_v0 = vld [vmem:[%s2361_s2 + $0x60] sm:$0xff]  }
  0x24   :  { %670 = vmatpush1.bf16.msra.mxu0 %v1862_v14  ;;  %v2000_v63 = vld [vmem:[%s2361_s2 + $0x18] sm:$0xff]   ;;  %v2002_v3 = vld [vmem:[%s2361_s2 + $0x20] sm:$0xff]   ;;  %v2003_v4 = vld [vmem:[%s2361_s2 + $0x68] sm:$0xff]  }
  0x25   :  { %671 = vmatprep.subr.bf16.mxu0 %v1863_v15  ;;  %v1914_v2 = vld [vmem:[#allocation2 + $0x154] ss:$8 sps:$4 sm:$0xff]   ;;  %v1912_v5 = vld [vmem:[#allocation2 + $0x150] ss:$8 sps:$4 sm:$0xff]   ;;  %v1917_v6 = vld [vmem:[#allocation2 + $0x164] ss:$8 sps:$4 sm:$0xff]  }
  0x26   :  { %1712 = vmatpush3.bf16.msra.mxu1 %v1996_v55  ;;  %v2004_v7 = vld [vmem:[%s2361_s2 + $0x28] sm:$0xff]   ;;  %v1920_v9 = vld [vmem:[#allocation2 + $0x174] ss:$8 sps:$4 sm:$0xff]   ;;  %v1918_v10 = vld [vmem:[#allocation2 + $0x170] ss:$8 sps:$4 sm:$0xff]  }
  0x27   :  { %1713 = vmatprep.subr.bf16.mxu1 %v1997_v56  ;;  %v1915_v8 = vld [vmem:[#allocation2 + $0x160] ss:$8 sps:$4 sm:$0xff]   ;;  %v1923_v11 = vld [vmem:[#allocation2 + $0x184] ss:$8 sps:$4 sm:$0xff]   ;;  %v1926_v14 = vld [vmem:[#allocation2 + $0x194] ss:$8 sps:$4 sm:$0xff]  }
  0x28   :  { %672 = vmatpush1.bf16.msra.mxu0 %v1865_v17  ;;  %v1921_v12 = vld [vmem:[#allocation2 + $0x180] ss:$8 sps:$4 sm:$0xff]   ;;  %v1924_v15 = vld [vmem:[#allocation2 + $0x190] ss:$8 sps:$4 sm:$0xff]   ;;  %v1929_v17 = vld [vmem:[#allocation2 + $0x1a4] ss:$8 sps:$4 sm:$0xff]  }
  0x29   :  { %673 = vmatprep.subr.bf16.mxu0 %v1866_v18  ;;  %v1927_v18 = vld [vmem:[#allocation2 + $0x1a0] ss:$8 sps:$4 sm:$0xff]   ;;  %v1932_v19 = vld [vmem:[#allocation2 + $0x1b4] ss:$8 sps:$4 sm:$0xff]   ;;  %v1930_v20 = vld [vmem:[#allocation2 + $0x1b0] ss:$8 sps:$4 sm:$0xff]  }
  0x2a   :  { %1714 = vmatpush3.bf16.msra.mxu1 %v1998_v60  ;;  %v1938_v23 = vld [vmem:[#allocation2 + $0x1d4] ss:$8 sps:$4 sm:$0xff]   ;;  %v1936_v24 = vld [vmem:[#allocation2 + $0x1d0] ss:$8 sps:$4 sm:$0xff]   ;;  %v1951_v38 = vld [vmem:[#allocation2 + $0x220] ss:$8 sps:$4 sm:$0xff]  }
  0x2b   :  { %1715 = vmatprep.subr.bf16.mxu1 %v1999_v62  ;;  %v1960_v44 = vld [vmem:[#allocation2 + $0x250] ss:$8 sps:$4 sm:$0xff]   ;;  %v1974_v51 = vld [vmem:[#allocation2 + $0x294] ss:$8 sps:$4 sm:$0xff]   ;;  %v1977_v53 = vld [vmem:[#allocation2 + $0x2a4] ss:$8 sps:$4 sm:$0xff]  }
  0x2c   :  { %674 = vmatpush1.bf16.msra.mxu0 %v1868_v21  ;;  %v1935_v21 = vld [vmem:[#allocation2 + $0x1c4] ss:$8 sps:$4 sm:$0xff]   ;;  %v1972_v52 = vld [vmem:[#allocation2 + $0x290] ss:$8 sps:$4 sm:$0xff]   ;;  %v1980_v55 = vld [vmem:[#allocation2 + $0x2b4] ss:$8 sps:$4 sm:$0xff]  }
  0x2d   :  { %675 = vmatprep.subr.bf16.mxu0 %v1869_v22  ;;  %v1933_v22 = vld [vmem:[#allocation2 + $0x1c0] ss:$8 sps:$4 sm:$0xff]   ;;  %v1978_v56 = vld [vmem:[#allocation2 + $0x2b0] ss:$8 sps:$4 sm:$0xff]  }
  0x2e   :  { %1716 = vmatpush3.bf16.msra.mxu1 %v2000_v63  ;;  %v1984_v60 = vld [vmem:[#allocation2 + $0x2d0] ss:$8 sps:$4 sm:$0xff]   ;;  %v1987_v62 = vld [vmem:[#allocation2 + $0x2e0] ss:$8 sps:$4 sm:$0xff]   ;;  %v1992_v63 = vld [vmem:[#allocation2 + $0x2f4] ss:$8 sps:$4 sm:$0xff]  }
  0x2f   :  { %1717 = vmatprep.subr.bf16.mxu1 %v2001_v0  ;;  %v1990_v0 = vld [vmem:[#allocation2 + $0x2f0] ss:$8 sps:$4 sm:$0xff]  }
  0x30   :  { %676 = vmatpush1.bf16.msra.mxu0 %v1871_v25  ;;  %v1941_v25 = vld [vmem:[#allocation2 + $0x1e4] ss:$8 sps:$4 sm:$0xff]  }
  0x31   :  { %677 = vmatprep.subr.bf16.mxu0 %v1872_v26  ;;  %v1939_v26 = vld [vmem:[#allocation2 + $0x1e0] ss:$8 sps:$4 sm:$0xff]  }
  0x32   :  { %1718 = vmatpush3.bf16.msra.mxu1 %v2002_v3  ;;  %v2006_v3 = vld [vmem:[%s2361_s2 + $0x30] sm:$0xff]  }
  0x33   :  { %1719 = vmatprep.subr.bf16.mxu1 %v2003_v4  ;;  %v2007_v4 = vld [vmem:[%s2361_s2 + $0x78] sm:$0xff]  }
  0x34   :  { %678 = vmatpush1.bf16.msra.mxu0 %v1874_v27  ;;  %v1944_v27 = vld [vmem:[#allocation2 + $0x1f4] ss:$8 sps:$4 sm:$0xff]  }
  0x35   :  { %679 = vmatprep.subr.bf16.mxu0 %v1875_v28  ;;  %v2185_v28 = vld.sshfl [vmem:[%s2359_s0 + $0x8] sm:$0x33 pattern:$0x76325410] }
  0x36   :  { %1720 = vmatpush3.bf16.msra.mxu1 %v2004_v7 }
  0x38   :  { %680 = vmatpush1.bf16.msra.mxu0 %v1877_v29  ;;  %v1942_v29 = vld [vmem:[#allocation2 + $0x1f0] ss:$8 sps:$4 sm:$0xff]  }
  0x39   :  { %681 = vmatprep.subr.bf16.mxu0 %v1878_v30  ;;  %v168_v30 = vcombine.high %v2185_v28, %v2185_v28 }
  0x3c   :  { %682 = vmatpush1.bf16.msra.mxu0 %v1880_v31  ;;  %v1947_v31 = vld [vmem:[#allocation2 + $0x204] ss:$8 sps:$4 sm:$0xff]  }
  0x3d   :  { %683 = vmatprep.subr.bf16.mxu0 %v1881_v32  ;;  %v177_v32 = vpack.c.bf16 %v2142_v41, %v2142_v41  ;;  %v1957_v41 = vld [vmem:[#allocation2 + $0x240] ss:$8 sps:$4 sm:$0xff]  }
  0x40   :  { %684 = vmatpush1.bf16.msra.mxu0 %v1883_v33  ;;  %v1945_v33 = vld [vmem:[#allocation2 + $0x200] ss:$8 sps:$4 sm:$0xff]  }
  0x41   :  { %685 = vmatprep.subr.bf16.mxu0 %v1884_v34  ;;  %v180_v34 = vpack.c.bf16 %v168_v30, %v168_v30 }
  0x44   :  { %686 = vmatpush1.bf16.msra.mxu0 %v1886_v35  ;;  %v1950_v35 = vld [vmem:[#allocation2 + $0x214] ss:$8 sps:$4 sm:$0xff]  }
  0x45   :  { %687 = vmatprep.subr.bf16.mxu0 %v1887_v36  ;;  %v1948_v36 = vld [vmem:[#allocation2 + $0x210] ss:$8 sps:$4 sm:$0xff]  }
  0x48   :  { %688 = vmatpush1.bf16.msra.mxu0 %v1889_v37  ;;  %v1953_v37 = vld [vmem:[#allocation2 + $0x224] ss:$8 sps:$4 sm:$0xff]  }
  0x49   :  { %689 = vmatprep.subr.bf16.mxu0 %v1890_v39  ;;  %v1956_v39 = vld [vmem:[#allocation2 + $0x234] ss:$8 sps:$4 sm:$0xff]  }
  0x4c   :  { %690 = vmatpush1.bf16.msra.mxu0 %v1892_v40  ;;  %v1954_v40 = vld [vmem:[#allocation2 + $0x230] ss:$8 sps:$4 sm:$0xff]  }
  0x4d   :  { %691 = vmatprep.subr.bf16.mxu0 %v1893_v42  ;;  %v1959_v42 = vld [vmem:[#allocation2 + $0x244] ss:$8 sps:$4 sm:$0xff]  }
  0x50   :  { %692 = vmatpush1.bf16.msra.mxu0 %v1895_v43  ;;  %v1962_v43 = vld [vmem:[#allocation2 + $0x254] ss:$8 sps:$4 sm:$0xff]  }
  0x51   :  { %702 = vmatprep.subr.bf16.mxu0 %v1899_v45  ;;  %v1965_v45 = vld [vmem:[#allocation2 + $0x264] ss:$8 sps:$4 sm:$0xff]  }
  0x53   :  { %694 = vmatmul.mubr.bf16.vlgmr.msra.gmra.mrb[0].mxu0 %v175_v46  ;;  %v1963_v46 = vld [vmem:[#allocation2 + $0x260] ss:$8 sps:$4 sm:$0xff]  }
  0x54   :  { %703 = vmatpush1.bf16.msra.mxu0 %v1897_v47  ;;  %734 = vmatprep.mubr.bf16.mxu0 %v178_v48  ;;  %v1968_v47 = vld [vmem:[#allocation2 + $0x274] ss:$8 sps:$4 sm:$0xff]   ;;  %v1966_v48 = vld [vmem:[#allocation2 + $0x270] ss:$8 sps:$4 sm:$0xff]  }
  0x55   :  { %704 = vmatprep.subr.bf16.mxu0 %v1902_v49  ;;  %v1971_v49 = vld [vmem:[#allocation2 + $0x284] ss:$8 sps:$4 sm:$0xff]  }
  0x58   :  { %705 = vmatpush1.bf16.msra.mxu0 %v1900_v50  ;;  %v1969_v50 = vld [vmem:[#allocation2 + $0x280] ss:$8 sps:$4 sm:$0xff]  }
  0x59   :  { %706 = vmatprep.subr.bf16.mxu0 %v1905_v54  ;;  %v1975_v54 = vld [vmem:[#allocation2 + $0x2a0] ss:$8 sps:$4 sm:$0xff]  }
  0x5c   :  { %707 = vmatpush1.bf16.msra.mxu0 %v1903_v57  ;;  %v1983_v57 = vld [vmem:[#allocation2 + $0x2c4] ss:$8 sps:$4 sm:$0xff]  }
  0x5d   :  { %708 = vmatprep.subr.bf16.mxu0 %v1908_v58  ;;  %v1981_v58 = vld [vmem:[#allocation2 + $0x2c0] ss:$8 sps:$4 sm:$0xff]  }
  0x60   :  { %709 = vmatpush1.bf16.msra.mxu0 %v1906_v59  ;;  %v1986_v59 = vld [vmem:[#allocation2 + $0x2d4] ss:$8 sps:$4 sm:$0xff]  }
  0x61   :  { %710 = vmatprep.subr.bf16.mxu0 %v1911_v61  ;;  %v1989_v61 = vld [vmem:[#allocation2 + $0x2e4] ss:$8 sps:$4 sm:$0xff]  }
  0x64   :  { %711 = vmatpush1.bf16.msra.mxu0 %v1909_v1  ;;  %v179_v1 = vpack.c.bf16 %v2185_v28, %v2185_v28 }
  0x65   :  { %712 = vmatprep.subr.bf16.mxu0 %v1914_v2  ;;  %v2005_v2 = vld [vmem:[%s2361_s2 + $0x70] sm:$0xff]  }
  0x66   :  { %1721 = vmatprep.subr.bf16.mxu1 %v2005_v2 }
  0x67   :  { %1722 = vmatpush3.bf16.msra.mxu1 %v2006_v3 }
  0x68   :  { %713 = vmatpush1.bf16.msra.mxu0 %v1912_v5  ;;  %v2008_v5 = vld [vmem:[%s2361_s2 + $0x38] sm:$0xff]   ;;  %1723 = vmatprep.subr.bf16.mxu1 %v2007_v4 }
  0x69   :  { %714 = vmatprep.subr.bf16.mxu0 %v1917_v6  ;;  %v2073_v6 = vmov 0.0  }
  0x6b   :  { %1724 = vmatpush3.bf16.msra.mxu1 %v2008_v5  ;;  %v958_v5 = vld [vmem:[%s2364_s5] sm:$0x3] }
  0x6c   :  { %715 = vmatpush1.bf16.msra.mxu0 %v1915_v8  ;;  %1762 = vmatprep.subr.bf16.mxu1 %v2073_v6 }
  0x6d   :  { %716 = vmatprep.subr.bf16.mxu0 %v1920_v9 }
  0x70   :  { %717 = vmatpush1.bf16.msra.mxu0 %v1918_v10 }
  0x71   :  { %718 = vmatprep.subr.bf16.mxu0 %v1923_v11 }
  0x74   :  { %719 = vmatpush1.bf16.msra.mxu0 %v1921_v12 }
  0x75   :  { %720 = vmatprep.subr.bf16.mxu0 %v1926_v14 }
  0x78   :  { %721 = vmatpush1.bf16.msra.mxu0 %v1924_v15 }
  0x79   :  { %722 = vmatprep.subr.bf16.mxu0 %v1929_v17 }
  0x7c   :  { %723 = vmatpush1.bf16.msra.mxu0 %v1927_v18  ;;  %v2009_v18 = vld [vmem:[%s2365_s6] ss:$8 sps:$4 sm:$0xff]  }
  0x7d   :  { %724 = vmatprep.subr.bf16.mxu0 %v1932_v19 }
  0x80   :  { %725 = vmatpush1.bf16.msra.mxu0 %v1930_v20  ;;  %v2010_v20 = vld [vmem:[%s2365_s6 + $0x10] ss:$8 sps:$4 sm:$0xff]  }
  0x81   :  { %726 = vmatprep.subr.bf16.mxu0 %v1935_v21  ;;  %v2011_v21 = vld [vmem:[%s2365_s6 + $0x20] ss:$8 sps:$4 sm:$0xff]  }
  0x84   :  { %727 = vmatpush1.bf16.msra.mxu0 %v1933_v22  ;;  %v2012_v22 = vld [vmem:[%s2365_s6 + $0x30] ss:$8 sps:$4 sm:$0xff]  }
  0x85   :  { %728 = vmatprep.subr.bf16.mxu0 %v1938_v23  ;;  %v2013_v23 = vld [vmem:[%s2365_s6 + $0x40] ss:$8 sps:$4 sm:$0xff]  }
  0x88   :  { %729 = vmatpush1.bf16.msra.mxu0 %v1936_v24  ;;  %v2014_v24 = vld [vmem:[%s2365_s6 + $0x50] ss:$8 sps:$4 sm:$0xff]  }
  0x89   :  { %730 = vmatprep.subr.bf16.mxu0 %v1941_v25  ;;  %v2015_v25 = vld [vmem:[%s2365_s6 + $0x60] ss:$8 sps:$4 sm:$0xff]  }
  0x8c   :  { %731 = vmatpush1.bf16.msra.mxu0 %v1939_v26  ;;  %v2016_v26 = vld [vmem:[%s2365_s6 + $0x70] ss:$8 sps:$4 sm:$0xff]  }
  0x8d   :  { %732 = vmatprep.subr.bf16.mxu0 %v1944_v27 }
  0x90   :  { %733 = vmatpush1.bf16.msra.mxu0 %v1942_v29 }
  0x91   :  { %743 = vmatprep.subr.bf16.mxu0 %v1947_v31 }
  0x93   :  { %735 = vmatmul.mubr.bf16.vlgmr.msra.gmra.mrb[0].mxu0 %v177_v32 }
  0x94   :  { %744 = vmatpush1.bf16.msra.mxu0 %v1945_v33  ;;  %775 = vmatprep.mubr.bf16.mxu0 %v180_v34 }
  0x95   :  { %745 = vmatprep.subr.bf16.mxu0 %v1950_v35 }
  0x98   :  { %746 = vmatpush1.bf16.msra.mxu0 %v1948_v36  ;;  %v2017_v36 = vld [vmem:[%s2362_s3] sm:$0xff]  }
  0x99   :  { %747 = vmatprep.subr.bf16.mxu0 %v1953_v37  ;;  %v2018_v37 = vld [vmem:[%s2362_s3 + $0x8] sm:$0xff]  }
  0x9c   :  { %748 = vmatpush1.bf16.msra.mxu0 %v1951_v38  ;;  %v2019_v38 = vld [vmem:[%s2362_s3 + $0x10] sm:$0xff]  }
  0x9d   :  { %749 = vmatprep.subr.bf16.mxu0 %v1956_v39  ;;  %v2020_v39 = vld [vmem:[%s2362_s3 + $0x18] sm:$0xff]  }
  0xa0   :  { %750 = vmatpush1.bf16.msra.mxu0 %v1954_v40  ;;  %v2021_v40 = vld [vmem:[%s2362_s3 + $0x20] sm:$0xff]  }
  0xa1   :  { %751 = vmatprep.subr.bf16.mxu0 %v1959_v42  ;;  %v2022_v42 = vld [vmem:[%s2362_s3 + $0x28] sm:$0xff]  }
  0xa4   :  { %752 = vmatpush1.bf16.msra.mxu0 %v1957_v41  ;;  %v2023_v41 = vld [vmem:[%s2362_s3 + $0x30] sm:$0xff]  }
  0xa5   :  { %753 = vmatprep.subr.bf16.mxu0 %v1962_v43  ;;  %v2024_v43 = vld [vmem:[%s2362_s3 + $0x38] sm:$0xff]  }
  0xa8   :  { %754 = vmatpush1.bf16.msra.mxu0 %v1960_v44 }
  0xa9   :  { %755 = vmatprep.subr.bf16.mxu0 %v1965_v45 }
  0xac   :  { %756 = vmatpush1.bf16.msra.mxu0 %v1963_v46 }
  0xad   :  { %757 = vmatprep.subr.bf16.mxu0 %v1968_v47 }
  0xb0   :  { %758 = vmatpush1.bf16.msra.mxu0 %v1966_v48 }
  0xb1   :  { %759 = vmatprep.subr.bf16.mxu0 %v1971_v49 }
  0xb4   :  { %760 = vmatpush1.bf16.msra.mxu0 %v1969_v50 }
  0xb5   :  { %761 = vmatprep.subr.bf16.mxu0 %v1974_v51 }
  0xb8   :  { %762 = vmatpush1.bf16.msra.mxu0 %v1972_v52 }
  0xb9   :  { %763 = vmatprep.subr.bf16.mxu0 %v1977_v53 }
  0xbc   :  { %764 = vmatpush1.bf16.msra.mxu0 %v1975_v54 }
  0xbd   :  { %765 = vmatprep.subr.bf16.mxu0 %v1980_v55 }
  0xc0   :  { %766 = vmatpush1.bf16.msra.mxu0 %v1978_v56 }
  0xc1   :  { %767 = vmatprep.subr.bf16.mxu0 %v1983_v57 }
  0xc4   :  { %768 = vmatpush1.bf16.msra.mxu0 %v1981_v58 }
  0xc5   :  { %769 = vmatprep.subr.bf16.mxu0 %v1986_v59 }
  0xc8   :  { %770 = vmatpush1.bf16.msra.mxu0 %v1984_v60 }
  0xc9   :  { %771 = vmatprep.subr.bf16.mxu0 %v1989_v61 }
  0xcc   :  { %772 = vmatpush1.bf16.msra.mxu0 %v1987_v62 }
  0xcd   :  { %773 = vmatprep.subr.bf16.mxu0 %v1992_v63 }
  0xd0   :  { %774 = vmatpush1.bf16.msra.mxu0 %v1990_v0 }
  0xd3   :  { %776 = vmatmul.mubr.bf16.vlgmr.msra.gmra.mrb[0].mxu0 %v179_v1 }
 0x1a6   :  { %v777_v7 = vpop.f32.mrb[0].mxu0 }
 0x1a7   :  { %v784_v8 = vmul.f32 0.2, %v777_v7  ;;  %v779_v9 = vpop.f32.mrb[1].mxu0 }
 0x1a8   :  { %v785_v10 = vmul.f32 0.2, %v779_v9  ;;  %v781_v11 = vpop.f32.mrb[2].mxu0 }
 0x1a9   :  { %v786_v12 = vmax.f32 %v777_v7, %v784_v8  ;;  %v782_v14 = vpop.f32.mrb[3].mxu0 }
 0x1aa   :  { %v787_v15 = vmax.f32 %v779_v9, %v785_v10  ;;  %v2286_v10 = vsub.s32 0, %v2132_v13 }
 0x1ab   :  { %v820_v19 = vpack.c.bf16 %v786_v12, %v786_v12 }
 0x1ac   :  { %v821_v17 = vpack.c.bf16 %v787_v15, %v787_v15  ;;  %v2291_v15 = vsub.s32 1, %v2132_v13  ;;  %v2026_v13 = vld [vmem:[%s2365_s6 + $0x14] ss:$8 sps:$4 sm:$0xff]  }
 0x1ae   :  { %950 = vmatprep.mubr.bf16.mxu1 %v821_v17 }
 0x1af   :  { %951 = vmatmul.mubr.bf16.vlgmr.msra.gmra.mrb[0].mxu1 %v820_v19 }
 0x1b0   :  { %1763 = vmatpush3.bf16.msra.mxu1 %v2009_v18  ;;  %1778 = vmatprep.mubr.msk.bf16.mxu1 %vm2074_vm0, %v2073_v6 }
 0x1b1   :  { %1764 = vmatprep.subr.bf16.mxu1 %v2073_v6 }
 0x1b4   :  { %1765 = vmatpush3.bf16.msra.mxu1 %v2010_v20 }
 0x1b5   :  { %1766 = vmatprep.subr.bf16.mxu1 %v2073_v6 }
 0x1b8   :  { %1767 = vmatpush3.bf16.msra.mxu1 %v2011_v21 }
 0x1b9   :  { %1768 = vmatprep.subr.bf16.mxu1 %v2073_v6 }
 0x1bc   :  { %1769 = vmatpush3.bf16.msra.mxu1 %v2012_v22 }
 0x1bd   :  { %1770 = vmatprep.subr.bf16.mxu1 %v2073_v6 }
 0x1c0   :  { %1771 = vmatpush3.bf16.msra.mxu1 %v2013_v23  ;;  %v2025_v23 = vld [vmem:[%s2365_s6 + $0x4] ss:$8 sps:$4 sm:$0xff]  }
 0x1c1   :  { %1772 = vmatprep.subr.bf16.mxu1 %v2073_v6 }
 0x1c4   :  { %1773 = vmatpush3.bf16.msra.mxu1 %v2014_v24 }
 0x1c5   :  { %1774 = vmatprep.subr.bf16.mxu1 %v2073_v6 }
 0x1c8   :  { %1775 = vmatpush3.bf16.msra.mxu1 %v2015_v25  ;;  %v2027_v25 = vld [vmem:[%s2365_s6 + $0x24] ss:$8 sps:$4 sm:$0xff]  }
 0x1c9   :  { %1776 = vmatprep.subr.bf16.mxu1 %v2073_v6 }
 0x1cc   :  { %1777 = vmatpush3.bf16.msra.mxu1 %v2016_v26  ;;  %v2028_v26 = vld [vmem:[%s2365_s6 + $0x34] ss:$8 sps:$4 sm:$0xff]  }
 0x1cd   :  { %1782 = vmatprep.subr.bf16.mxu1 %v2073_v6 }
 0x282   :  { %v1725_v27 = vpop.f32.mrb[0].mxu1 }
 0x283   :  { %v1726_v28 = vpop.f32.mrb[1].mxu1 }
 0x284   :  { %v2240_v29 = vadd.f32 %v1726_v28, %v1725_v27  ;;  %v1728_v30 = vpop.f32.mrb[2].mxu1 }
 0x285   :  { %v1729_v31 = vpop.f32.mrb[3].mxu1 }
 0x286   :  { %v959_v32 = vmul.f32 %v2240_v29, %v2240_v29 }
 0x288   :  { %v961_v33 = vrot.slane %v959_v32, 6 }
 0x28a   :  { %v964_v34 = vsel %vm963_vm1, %v2240_v29, %v961_v33 }
 0x28b   :  { %v981_v35 = vpack.c.bf16 %v964_v34, %v964_v34 }
 0x28d   :  { %1779 = vmatmul.mubr.bf16.vlgmr.msra.gmra.mrb[4].mxu1 %v981_v35  ;;  %v2029_v35 = vld [vmem:[%s2363_s4] sm:$0xff]  }
 0x28e   :  { %1798 = vmatprep.mubr.msk.bf16.mxu1 %vm2074_vm0, %v2073_v6  ;;  %1783 = vmatpush3.bf16.msra.mxu1 %v2017_v36  ;;  %v2030_v36 = vld [vmem:[%s2363_s4 + $0x8] sm:$0xff]  }
 0x28f   :  { %1784 = vmatprep.subr.bf16.mxu1 %v2073_v6 }
 0x292   :  { %1785 = vmatpush3.bf16.msra.mxu1 %v2018_v37  ;;  %v2031_v37 = vld [vmem:[%s2363_s4 + $0x10] sm:$0xff]  }
 0x293   :  { %1786 = vmatprep.subr.bf16.mxu1 %v2073_v6 }
 0x296   :  { %1787 = vmatpush3.bf16.msra.mxu1 %v2019_v38  ;;  %v2032_v38 = vld [vmem:[%s2363_s4 + $0x18] sm:$0xff]  }
 0x297   :  { %1788 = vmatprep.subr.bf16.mxu1 %v2073_v6 }
 0x29a   :  { %1789 = vmatpush3.bf16.msra.mxu1 %v2020_v39 }
 0x29b   :  { %1790 = vmatprep.subr.bf16.mxu1 %v2073_v6 }
 0x29e   :  { %1791 = vmatpush3.bf16.msra.mxu1 %v2021_v40 }
 0x29f   :  { %1792 = vmatprep.subr.bf16.mxu1 %v2073_v6 }
 0x2a2   :  { %1793 = vmatpush3.bf16.msra.mxu1 %v2022_v42 }
 0x2a3   :  { %1794 = vmatprep.subr.bf16.mxu1 %v2073_v6 }
 0x2a6   :  { %1795 = vmatpush3.bf16.msra.mxu1 %v2023_v41 }
 0x2a7   :  { %1796 = vmatprep.subr.bf16.mxu1 %v2073_v6 }
 0x2aa   :  { %1797 = vmatpush3.bf16.msra.mxu1 %v2024_v43 }
 0x2ab   :  { %1802 = vmatprep.subr.bf16.mxu1 %v2073_v6 }
 0x360   :  { %v1064_v44 = vpop.f32.mrb[4].mxu1 }
 0x361   :  { %v1070_v45 = vsel %vm963_vm1, %v1064_v44, 0.0  ;;  %v1078_v46 = vrot.slane %v1064_v44, 2  ;;  %v1780_v47 = vpop.f32.mrb[5].mxu1 }
 0x362   :  { %v1071_v48 = vrot.slane %v1070_v45, 4  ;;  %v1067_v49 = vpop.f32.mrb[6].mxu1 }
 0x363   :  { %v1080_v50 = vsel %vm963_vm1, %v1078_v46, 0.0  ;;  %v1781_v51 = vpop.f32.mrb[7].mxu1 }
 0x364   :  { %v1072_v52 = vadd.f32 %v1071_v48, %v1070_v45  ;;  %v1081_v53 = vrot.slane %v1080_v50, 4 }
 0x366   :  { %v1073_v54 = vrot.slane %v1072_v52, 2  ;;  %v1082_v55 = vadd.f32 %v1081_v53, %v1080_v50 }
 0x368   :  { %v1074_v56 = vadd.f32 %v1073_v54, %v1072_v52  ;;  %v1083_v57 = vrot.slane %v1082_v55, 2 }
 0x36a   :  { %v1075_v58 = vrot.slane %v1074_v56, 1  ;;  %v1084_v59 = vadd.f32 %v1083_v57, %v1082_v55 }
 0x36c   :  { %v1076_v60 = vadd.f32 %v1075_v58, %v1074_v56  ;;  %v1085_v61 = vrot.slane %v1084_v59, 1 }
 0x36e   :  { %v1086_v62 = vadd.f32 %v1085_v61, %v1084_v59  ;;  %v1087_v63 = vmul.f32 0.03125, %v1076_v60 }
 0x370   :  { %v1088_v0 = vmul.f32 0.03125, %v1086_v62  ;;  %v1089_v1 = vmul.f32 %v1087_v63, %v1087_v63 }
 0x372   :  { %v1090_v2 = vsub.f32 %v1088_v0, %v1089_v1  ;;  %v1224_v0 = vld [vmem:[%s2364_s5 + $0x2] sm:$0x3] }
 0x374   :  { %v1091_v3 = vmax.f32 %v1090_v2, 0.0 }
 0x376   :  { %v1092_v4 = vadd.f32 1e-05, %v1091_v3 }
 0x378   :  { %2035 = vrsqrt.f32 %v1092_v4 }
 0x382   :  { %v2036_v7 = vpop.eup %2035 }
 0x383   :  { %v1094_v8 = vmul.f32 %v2036_v7, %v958_v5 }
 0x385   :  { %v1095_v9 = vmul.f32 %v1094_v8, %v1087_v63  ;;  %v1110_v14 = vrot.slane %v1094_v8, %v2286_v10 }
 0x387   :  { %v1103_v11 = vrot.slane %v1095_v9, %v2135_v16  ;;  %v1111_v18 = vmul.f32 %v2240_v29, %v1110_v14 }
 0x389   :  { %v1104_v12 = vrot.slane %v1103_v11, 7 }
 0x38b   :  { %v1106_v17 = vsub.f32 %v958_v5, %v1104_v12 }
 0x38d   :  { %v1115_v19 = vrot.slane %v1106_v17, %v2291_v15 }
 0x38f   :  { %v1116_v20 = vadd.f32 %v1115_v19, %v1111_v18  ;;  %v2033_v19 = vld [vmem:[%s2366_s7] sm:$0xff]  }
 0x391   :  { %v1117_v21 = vmul.f32 0.2, %v1116_v20 }
 0x393   :  { %v1118_v22 = vmax.f32 %v1116_v20, %v1117_v21  ;;  %v2034_v20 = vld [vmem:[%s2366_s7 + $0x8] sm:$0xff]  }
 0x395   :  { %v1135_v24 = vpack.c.bf16 %v1118_v22, %v1118_v22 }
 0x397   :  { %1799 = vmatmul.mubr.bf16.vlgmr.msra.gmra.mrb[8].mxu1 %v1135_v24 }
 0x398   :  { %1803 = vmatpush3.bf16.msra.mxu1 %v2025_v23  ;;  %1810 = vmatprep.mubr.msk.bf16.mxu1 %vm2074_vm0, %v2073_v6 }
 0x399   :  { %1804 = vmatprep.subr.bf16.mxu1 %v2073_v6 }
 0x39c   :  { %1805 = vmatpush3.bf16.msra.mxu1 %v2026_v13 }
 0x39d   :  { %1806 = vmatprep.subr.bf16.mxu1 %v2073_v6 }
 0x3a0   :  { %1807 = vmatpush3.bf16.msra.mxu1 %v2027_v25 }
 0x3a1   :  { %1808 = vmatprep.subr.bf16.mxu1 %v2073_v6 }
 0x3a4   :  { %1809 = vmatpush3.bf16.msra.mxu1 %v2028_v26 }
 0x3a5   :  { %1814 = vmatprep.subr.bf16.mxu1 %v2073_v6 }
 0x46a   :  { %v1218_v27 = vpop.f32.mrb[8].mxu1 }
 0x46b   :  { %v1225_v28 = vmul.f32 %v1218_v27, %v1218_v27  ;;  %v1800_v29 = vpop.f32.mrb[9].mxu1 }
 0x46c   :  { %v1221_v30 = vpop.f32.mrb[10].mxu1 }
 0x46d   :  { %v1227_v31 = vrot.slane %v1225_v28, 6  ;;  %v1801_v32 = vpop.f32.mrb[11].mxu1 }
 0x46f   :  { %v1229_v33 = vsel %vm963_vm1, %v1218_v27, %v1227_v31 }
 0x470   :  { %v1238_v34 = vpack.c.bf16 %v1229_v33, %v1229_v33 }
 0x472   :  { %1811 = vmatmul.mubr.msk.bf16.vlgmr.msra.gmra.mrb[12].mxu1 %vm1263_vm2, %v1238_v34 }
 0x473   :  { %1822 = vmatprep.mubr.msk.bf16.mxu1 %vm2074_vm0, %v2073_v6  ;;  %1815 = vmatpush3.bf16.msra.mxu1 %v2029_v35 }
 0x474   :  { %1816 = vmatprep.subr.bf16.mxu1 %v2073_v6 }
 0x477   :  { %1817 = vmatpush3.bf16.msra.mxu1 %v2030_v36 }
 0x478   :  { %1818 = vmatprep.subr.bf16.mxu1 %v2073_v6 }
 0x47b   :  { %1819 = vmatpush3.bf16.msra.mxu1 %v2031_v37 }
 0x47c   :  { %1820 = vmatprep.subr.bf16.mxu1 %v2073_v6 }
 0x47f   :  { %1821 = vmatpush3.bf16.msra.mxu1 %v2032_v38 }
 0x480   :  { %1826 = vmatprep.subr.bf16.mxu1 %v2073_v6 }
 0x545   :  { %v1301_v39 = vpop.f32.mrb[12].mxu1 }
 0x546   :  { %v1308_v40 = vsel %vm1307_vm3, %v1301_v39, 0.0  ;;  %v1316_v42 = vrot.slane %v1301_v39, 2  ;;  %v1812_v41 = vpop.f32.mrb[13].mxu1 }
 0x547   :  { %v1309_v43 = vrot.slane %v1308_v40, 4  ;;  %v1304_v44 = vpop.f32.mrb[14].mxu1 }
 0x548   :  { %v1318_v45 = vsel %vm1307_vm3, %v1316_v42, 0.0  ;;  %v1813_v46 = vpop.f32.mrb[15].mxu1 }
 0x549   :  { %v1310_v47 = vadd.f32 %v1309_v43, %v1308_v40  ;;  %v1319_v48 = vrot.slane %v1318_v45, 4 }
 0x54b   :  { %v1311_v49 = vrot.slane %v1310_v47, 2  ;;  %v1320_v50 = vadd.f32 %v1319_v48, %v1318_v45 }
 0x54d   :  { %v1312_v51 = vadd.f32 %v1311_v49, %v1310_v47  ;;  %v1321_v52 = vrot.slane %v1320_v50, 2  ;;  %v1433_v47 = vld [vmem:[%s2364_s5 + $0x4] sm:$0x3] }
 0x54f   :  { %v1313_v53 = vrot.slane %v1312_v51, 1  ;;  %v1322_v54 = vadd.f32 %v1321_v52, %v1320_v50 }
 0x551   :  { %v1314_v55 = vadd.f32 %v1313_v53, %v1312_v51  ;;  %v1323_v56 = vrot.slane %v1322_v54, 1 }
 0x553   :  { %v1324_v57 = vadd.f32 %v1323_v56, %v1322_v54  ;;  %v1325_v58 = vmul.f32 0.125, %v1314_v55 }
 0x555   :  { %v1326_v59 = vmul.f32 0.125, %v1324_v57  ;;  %v1327_v60 = vmul.f32 %v1325_v58, %v1325_v58 }
 0x557   :  { %v1328_v61 = vsub.f32 %v1326_v59, %v1327_v60 }
 0x559   :  { %v1329_v62 = vmax.f32 %v1328_v61, 0.0 }
 0x55b   :  { %v1330_v63 = vadd.f32 1e-05, %v1329_v62 }
 0x55d   :  { %2037 = vrsqrt.f32 %v1330_v63 }
 0x567   :  { %v2038_v1 = vpop.eup %2037 }
 0x568   :  { %v1332_v2 = vmul.f32 %v2038_v1, %v1224_v0 }
 0x56a   :  { %v1333_v3 = vmul.f32 %v1332_v2, %v1325_v58  ;;  %v1348_v4 = vrot.slane %v1332_v2, %v2286_v10 }
 0x56c   :  { %v1341_v5 = vrot.slane %v1333_v3, %v2135_v16  ;;  %v1349_v7 = vmul.f32 %v1348_v4, %v1218_v27 }
 0x56e   :  { %v1342_v8 = vrot.slane %v1341_v5, 7 }
 0x570   :  { %v1344_v9 = vsub.f32 %v1224_v0, %v1342_v8 }
 0x572   :  { %v1353_v11 = vrot.slane %v1344_v9, %v2291_v15 }
 0x574   :  { %v1354_v12 = vadd.f32 %v1353_v11, %v1349_v7 }
 0x576   :  { %v1355_v14 = vmul.f32 0.2, %v1354_v12 }
 0x578   :  { %v1356_v17 = vmax.f32 %v1354_v12, %v1355_v14 }
 0x57a   :  { %v1365_v18 = vpack.c.bf16 %v1356_v17, %v1356_v17 }
 0x57c   :  { %1823 = vmatmul.mubr.msk.bf16.vlgmr.msra.gmra.mrb[16].mxu1 %vm1263_vm2, %v1365_v18 }
 0x57d   :  { %1830 = vmatprep.mubr.msk.bf16.mxu1 %vm2074_vm0, %v2073_v6  ;;  %1827 = vmatpush3.bf16.msra.mxu1 %v2033_v19 }
 0x57e   :  { %1828 = vmatprep.subr.bf16.mxu1 %v2073_v6 }
 0x581   :  { %1829 = vmatpush3.bf16.msra.mxu1 %v2034_v20 }
 0x64f   :  { %v1427_v21 = vpop.f32.mrb[16].mxu1 }
 0x650   :  { %v1434_v22 = vmul.f32 %v1427_v21, %v1427_v21  ;;  %v1824_v23 = vpop.f32.mrb[17].mxu1 }
 0x651   :  { %v1430_v24 = vpop.f32.mrb[18].mxu1 }
 0x652   :  { %v1436_v13 = vrot.slane %v1434_v22, 6  ;;  %v1825_v25 = vpop.f32.mrb[19].mxu1 }
 0x654   :  { %v1438_v26 = vsel %vm963_vm1, %v1427_v21, %v1436_v13 }
 0x655   :  { %v1440_v27 = vsel %vm1439_vm4, %v1438_v26, 0.0  ;;  %v1448_v28 = vrot.slane %v1438_v26, 2 }
 0x656   :  { %v1441_v29 = vrot.slane %v1440_v27, 4 }
 0x657   :  { %v1450_v30 = vsel %vm1439_vm4, %v1448_v28, 0.0 }
 0x658   :  { %v1442_v31 = vadd.f32 %v1441_v29, %v1440_v27  ;;  %v1451_v6 = vrot.slane %v1450_v30, 4 }
 0x65a   :  { %v1443_v32 = vrot.slane %v1442_v31, 2  ;;  %v1452_v33 = vadd.f32 %v1451_v6, %v1450_v30 }
 0x65c   :  { %v1444_v34 = vadd.f32 %v1443_v32, %v1442_v31  ;;  %v1453_v35 = vrot.slane %v1452_v33, 2 }
 0x65e   :  { %v1445_v36 = vrot.slane %v1444_v34, 1  ;;  %v1454_v37 = vadd.f32 %v1453_v35, %v1452_v33 }
 0x660   :  { %v1446_v38 = vadd.f32 %v1445_v36, %v1444_v34  ;;  %v1455_v39 = vrot.slane %v1454_v37, 1 }
 0x662   :  { %v1456_v40 = vadd.f32 %v1455_v39, %v1454_v37  ;;  %v1457_v42 = vmul.f32 0.5, %v1446_v38 }
 0x664   :  { %v1458_v41 = vmul.f32 0.5, %v1456_v40  ;;  %v1459_v43 = vmul.f32 %v1457_v42, %v1457_v42 }
 0x666   :  { %v1460_v44 = vsub.f32 %v1458_v41, %v1459_v43 }
 0x668   :  { %v1461_v45 = vmax.f32 %v1460_v44, 0.0 }
 0x66a   :  { %v1462_v46 = vadd.f32 1e-05, %v1461_v45 }
 0x66c   :  { %2039 = vrsqrt.f32 %v1462_v46 }
 0x676   :  { %v2040_v48 = vpop.eup %2039 }
 0x677   :  { %v1464_v49 = vmul.f32 %v2040_v48, %v1433_v47 }
 0x679   :  { %v1465_v50 = vmul.f32 %v1464_v49, %v1457_v42  ;;  %v1480_v53 = vrot.slane %v1464_v49, %v2286_v10 }
 0x67b   :  { %v1473_v51 = vrot.slane %v1465_v50, %v2135_v16  ;;  %v1481_v55 = vmul.f32 %v1480_v53, %v1427_v21 }
 0x67d   :  { %v1474_v52 = vrot.slane %v1473_v51, 7 }
 0x67f   :  { %v1476_v54 = vsub.f32 %v1433_v47, %v1474_v52 }
 0x681   :  { %v1485_v56 = vrot.slane %v1476_v54, %v2291_v15 }
 0x683   :  { %v1486_v57 = vadd.f32 %v1485_v56, %v1481_v55 }
 0x685   :  { %v1487_v58 = vmul.f32 0.2, %v1486_v57 }
 0x687   :  { %v1488_v59 = vmax.f32 %v1486_v57, %v1487_v58 }
 0x689   :  { %v1493_v60 = vpack.c.bf16 %v1488_v59, %v1488_v59 }
 0x68b   :  { %1831 = vmatmul.mubr.msk.bf16.vlgmr.msra.gmra.mrb[20].mxu1 %vm1506_vm5, %v1493_v60 }
 0x75e   :  { %v1544_v61 = vpop.f32.mrb[20].mxu1 }
 0x75f   :  { %v1550_v62 = vand.u32 2147483647, %v1544_v61  ;;  %v1832_v63 = vpop.f32.mrb[21].mxu1  ;;  %vm1557_vm7 = vcmp.ge.f32.partialorder %v1544_v61, 0.0 }
 0x760   :  { %v1547_v0 = vpop.f32.mrb[22].mxu1 }
 0x761   :  { %v1551_v1 = vsub.f32 0.0, %v1550_v62  ;;  %v1833_v2 = vpop.f32.mrb[23].mxu1 }
 0x763   :  { %v1552_v16 = vmul.f32 1.442695, %v1551_v1 }
 0x765   :  { %2041 = vpow2.f32 %v1552_v16 }
 0x76f   :  { %v2042_v3 = vpop.eup %2041 }
 0x770   :  { %v1554_v10 = vadd.f32 1.0, %v2042_v3 }
 0x772   :  { %2043 = vrcp.f32 %v1554_v10 }
 0x77c   :  { %v2044_v4 = vpop.eup %2043 }
 0x77d   :  { %v1558_v5 = vmul.f32 %v2044_v4, %v2042_v3 }
 0x77f   :  { %v1559_v15 = vsel %vm1557_vm7, %v2044_v4, %v1558_v5 }
 0x780   :  { %1561 = vst.msk [vmem:[%s2367_s8] sm:$0x3] %vm1560_vm6, %v1559_v15 }
 0x781   :  { %1566 = vsyncpa [#allocation3], 1 }

</bundles_post_ra>
